<compile_context>
chip_gen: v7x
topology: tpu7x:2x2x1
jax: 0.10.0
libtpu: 0.0.40
codegen_flags: <defaults>
</compile_context>

<pallas_src>
import functools

import jax
import jax.numpy as jnp
from jax.experimental import pallas as pl
from jax.experimental.pallas import tpu as pltpu


_LANE = 128
_MIB = 1024 * 1024


def _round_up(x, m):
    return (x + m - 1) // m * m


def _pad2d(x, rows, cols):
    r, c = x.shape
    return jnp.pad(x, ((0, rows - r), (0, cols - c)))


# ---------------------------------------------------------------------------
# Path 1: "resident A" kernel -- whole bf16 A lives in VMEM, read from HBM once.
#   grid = (phase, row_tile)
#   phase 0, tile i:  H_i = ReLU(A[i*tm:,:] @ XW1 + b1);  hw2[i*tm:] = H_i @ W2
#   phase 1, tile i:  Z_i = A[i*tm:,:] @ hw2 + b2   -> output row tile
# ---------------------------------------------------------------------------
def _gcn_resident_kernel(a_ref, xw1_ref, b1_ref, w2_ref, b2_ref, o_ref,
                         hw2_ref, *, tm):
    phase = pl.program_id(0)
    i = pl.program_id(1)
    row0 = pl.multiple_of(i * tm, tm)

    @pl.when(phase == 0)
    def _():
        agg = jnp.dot(a_ref[pl.ds(row0, tm), :], xw1_ref[...],
                      preferred_element_type=jnp.float32)
        h = jnp.maximum(agg + b1_ref[...], 0.0)          # f32 epilogue on VPU
        hw2 = jnp.dot(h.astype(w2_ref.dtype), w2_ref[...],
                      preferred_element_type=jnp.float32)
        hw2_ref[pl.ds(row0, tm), :] = hw2.astype(hw2_ref.dtype)

    @pl.when(phase == 1)
    def _():
        z = jnp.dot(a_ref[pl.ds(row0, tm), :], hw2_ref[...],
                    preferred_element_type=jnp.float32)
        o_ref[...] = (z + b2_ref[...]).astype(o_ref.dtype)


# ---------------------------------------------------------------------------
# Path 2: "streamed" kernel -- A K-tiled into (tm, tk) blocks, VMEM bounded.
#   grid = (phase, row_tile, k)   (reduction axis last)
# ---------------------------------------------------------------------------
def _gcn_streamed_kernel(a_ref, xw1_ref, b1_ref, w2_ref, b2_ref, o_ref,
                         acc_ref, hw2_ref, *, tm, tk):
    phase = pl.program_id(0)
    i = pl.program_id(1)
    k = pl.program_id(2)
    kt = pl.num_programs(2)

    @pl.when(phase == 0)
    def _():
        part = jnp.dot(a_ref[...], xw1_ref[...],
                       preferred_element_type=jnp.float32)

        @pl.when(k == 0)
        def _():
            acc_ref[...] = part

        @pl.when(k != 0)
        def _():
            acc_ref[...] += part

        @pl.when(k == kt - 1)
        def _():
            h = jnp.maximum(acc_ref[...] + b1_ref[...], 0.0)
            hw2 = jnp.dot(h.astype(w2_ref.dtype), w2_ref[...],
                          preferred_element_type=jnp.float32)
            row0 = pl.multiple_of(i * tm, tm)
            hw2_ref[pl.ds(row0, tm), :] = hw2.astype(hw2_ref.dtype)

    @pl.when(phase == 1)
    def _():
        col0 = pl.multiple_of(k * tk, tk)
        part = jnp.dot(a_ref[...], hw2_ref[pl.ds(col0, tk), :],
                       preferred_element_type=jnp.float32)

        @pl.when(k == 0)
        def _():
            o_ref[...] = part + b2_ref[...]

        @pl.when(k != 0)
        def _():
            o_ref[...] += part


def gcn_forward(a_hat, x, w1, b1, w2, b2, *, force_streamed=False):
    """Fused, lane-padded 2-layer GCN forward (Pallas TPU)."""
    n = a_hat.shape[0]
    f_in = x.shape[1]
    hidden = w1.shape[1]
    f_out = w2.shape[1]

    n_p = _round_up(max(n, 1), _LANE)
    f_p = _round_up(f_in, _LANE)
    h_p = _round_up(hidden, _LANE)
    o_p = _round_up(f_out, _LANE)

    # Cast to bf16 BEFORE padding (halves wrapper-side HBM traffic on A).
    # Zero padding is exact: padded A rows/cols are zero, so padded nodes never
    # contribute to real (sliced) outputs.
    a_p = _pad2d(a_hat.astype(jnp.bfloat16), n_p, n_p)
    x_p = _pad2d(x.astype(jnp.bfloat16), n_p, f_p)
    w1_p = _pad2d(w1.astype(jnp.bfloat16), f_p, h_p)
    b1_p = _pad2d(b1.astype(jnp.float32), 1, h_p)
    w2_p = _pad2d(w2.astype(jnp.bfloat16), h_p, o_p)
    b2_p = _pad2d(b2.astype(jnp.float32), 1, o_p)

    # XW1 precomputed outside the kernel (review item #1): tiny XLA bf16 matmul
    # with f32 accumulation, stored bf16 for the MXU.
    xw1_p = jnp.dot(x_p, w1_p,
                    preferred_element_type=jnp.float32).astype(jnp.bfloat16)

    tm = 256 if n_p % 256 == 0 else _LANE
    nt = n_p // tm

    # Resident-path VMEM estimate (default 2 pipeline buffers per operand).
    resident_bytes = (2 * n_p * n_p * 2        # A (bf16)
                      + 2 * n_p * h_p * 2      # XW1
                      + 2 * h_p * o_p * 2      # W2
                      + 2 * (h_p + o_p) * 4    # biases
                      + n_p * o_p * 2          # hw2 scratch
                      + 2 * tm * o_p * 4)      # output tile
    use_resident = (not force_streamed) and resident_bytes <= 40 * _MIB

    if use_resident:
        grid = (2, nt)
        in_specs = [
            pl.BlockSpec((n_p, n_p), lambda p, i: (0, 0)),   # A (VMEM-resident)
            pl.BlockSpec((n_p, h_p), lambda p, i: (0, 0)),   # XW1
            pl.BlockSpec((1, h_p), lambda p, i: (0, 0)),     # b1
            pl.BlockSpec((h_p, o_p), lambda p, i: (0, 0)),   # W2
            pl.BlockSpec((1, o_p), lambda p, i: (0, 0)),     # b2
        ]
        # Output block stays at (0,0) during phase 0 (never written there),
        # cycles row tiles only in phase 1.
        out_specs = pl.BlockSpec((tm, o_p), lambda p, i: (i * p, 0))
        scratch = [pltpu.VMEM((n_p, o_p), jnp.bfloat16)]     # H @ W2 buffer
        kernel = functools.partial(_gcn_resident_kernel, tm=tm)
        semantics = ("arbitrary", "arbitrary")
        vmem_need = resident_bytes
        a_reads, xw1_reads = 1, 1
    else:
        tk = next(c for c in (2048, 1024, 512, 256, _LANE) if n_p % c == 0)
        kt = n_p // tk
        grid = (2, nt, kt)
        in_specs = [
            pl.BlockSpec((tm, tk), lambda p, i, k: (i, k)),              # A tile
            pl.BlockSpec((tk, h_p), lambda p, i, k: ((1 - p) * k, 0)),   # XW1
            pl.BlockSpec((1, h_p), lambda p, i, k: (0, 0)),              # b1
            pl.BlockSpec((h_p, o_p), lambda p, i, k: (0, 0)),            # W2
            pl.BlockSpec((1, o_p), lambda p, i, k: (0, 0)),              # b2
        ]
        out_specs = pl.BlockSpec((tm, o_p), lambda p, i, k: (i * p, 0))
        scratch = [pltpu.VMEM((tm, h_p), jnp.float32),    # layer-1 accumulator
                   pltpu.VMEM((n_p, o_p), jnp.bfloat16)]  # H @ W2 buffer
        kernel = functools.partial(_gcn_streamed_kernel, tm=tm, tk=tk)
        semantics = ("arbitrary", "arbitrary", "arbitrary")
        vmem_need = (2 * tm * tk * 2 + 2 * tk * h_p * 2 + 2 * h_p * o_p * 2
                     + 2 * (h_p + o_p) * 4 + tm * h_p * 4 + n_p * o_p * 2
                     + 2 * tm * o_p * 4)
        a_reads, xw1_reads = 2, nt + 1

    # Request only what the tiling needs (with headroom), capped below v7x's
    # 64 MiB physical VMEM.
    vmem_limit = int(min(48 * _MIB, max(16 * _MIB, 2 * vmem_need)))

    flops = 2 * n_p * n_p * h_p + 2 * n_p * h_p * o_p + 2 * n_p * n_p * o_p
    bytes_accessed = (a_reads * n_p * n_p * 2
                      + xw1_reads * n_p * h_p * 2
                      + h_p * o_p * 2 + (h_p + o_p) * 4
                      + n_p * o_p * 4)                       # output writeback

    out_p = pl.pallas_call(
        kernel,
        out_shape=jax.ShapeDtypeStruct((n_p, o_p), jnp.float32),
        grid_spec=pltpu.PrefetchScalarGridSpec(
            num_scalar_prefetch=0,
            grid=grid,
            in_specs=in_specs,
            out_specs=out_specs,
            scratch_shapes=scratch,
        ),
        compiler_params=pltpu.CompilerParams(
            # Phase 1 consumes VMEM scratch written by every phase-0 row tile,
            # so no grid axis may be megacore-parallel.
            dimension_semantics=semantics,
            vmem_limit_bytes=vmem_limit,
        ),
        cost_estimate=pl.CostEstimate(
            flops=flops, transcendentals=0, bytes_accessed=bytes_accessed),
    )(a_p, xw1_p, b1_p, w2_p, b2_p)

    return out_p[:n, :f_out]


class GCN:
    """JAX/Pallas port of models/gcn.py::GCN (two-layer GCN)."""

    def __init__(self, in_feats, hidden_size, out_len, key):
        k1, k2, k3, k4 = jax.random.split(key, 4)
        s1 = 1.0 / jnp.sqrt(in_feats)
        s2 = 1.0 / jnp.sqrt(hidden_size)
        self.w1 = jax.random.normal(k1, (in_feats, hidden_size), jnp.float32) * s1
        self.b1 = jax.random.normal(k2, (1, hidden_size), jnp.float32) * s1
        self.w2 = jax.random.normal(k3, (hidden_size, out_len), jnp.float32) * s2
        self.b2 = jax.random.normal(k4, (1, out_len), jnp.float32) * s2

    def __call__(self, a_hat, x):
        return gcn_forward(a_hat, x, self.w1, self.b1, self.w2, self.b2)


def _reference(a_hat, x, w1, b1, w2, b2):
    """Pure-JAX f32 reference for correctness check."""
    h = jnp.maximum(a_hat @ (x @ w1) + b1, 0.0)
    return a_hat @ (h @ w2) + b2


if __name__ == "__main__":
    key = jax.random.PRNGKey(0)
    k_adj, k_feat, k_model, k_adj2, k_feat2 = jax.random.split(key, 5)

    in_feats, hidden_size, out_len = 8, 32, 4
    model = GCN(in_feats, hidden_size, out_len, k_model)

    def make_graph(k_a, k_x, n_nodes):
        adj_raw = jax.random.uniform(k_a, (n_nodes, n_nodes)) > 0.7
        adj = jnp.logical_or(adj_raw, adj_raw.T).astype(jnp.float32)
        adj = adj + jnp.eye(n_nodes, dtype=jnp.float32)
        a_hat = adj / jnp.sum(adj, axis=1, keepdims=True)   # row-normalized
        x = jax.random.normal(k_x, (n_nodes, in_feats), jnp.float32)
        return a_hat, x

    # --- Path 1: resident-A kernel (small graph, N=16) ----------------------
    a_hat, x = make_graph(k_adj, k_feat, 16)
    out = jax.block_until_ready(jax.jit(model.__call__)(a_hat, x))
    ref = _reference(a_hat, x, model.w1, model.b1, model.w2, model.b2)
    assert out.shape == (16, out_len), out.shape
    max_diff = float(jnp.max(jnp.abs(out - ref)))
    assert jnp.allclose(out, ref, atol=5e-2, rtol=5e-2), (
        f"resident path mismatch: max abs diff = {max_diff}")

    # --- Path 2: streamed / K-tiled kernel (forced, N=300) ------------------
    a_hat2, x2 = make_graph(k_adj2, k_feat2, 300)
    fwd_streamed = jax.jit(lambda a, xx: gcn_forward(
        a, xx, model.w1, model.b1, model.w2, model.b2, force_streamed=True))
    out2 = jax.block_until_ready(fwd_streamed(a_hat2, x2))
    ref2 = _reference(a_hat2, x2, model.w1, model.b1, model.w2, model.b2)
    assert out2.shape == (300, out_len), out2.shape
    max_diff2 = float(jnp.max(jnp.abs(out2 - ref2)))
    assert jnp.allclose(out2, ref2, atol=5e-2, rtol=5e-2), (
        f"streamed path mismatch: max abs diff = {max_diff2}")

    print("KERNEL_OK")
</pallas_src>

<mosaic_0001>
module attributes {stable_mosaic.version = 11 : i64} {
  func.func @_gcn_resident_kernel(%arg0: i32, %arg1: i32, %arg2: memref<128x128xbf16, #tpu.memory_space<vmem>>, %arg3: memref<128x128xbf16, #tpu.memory_space<vmem>>, %arg4: memref<1x128xf32, #tpu.memory_space<vmem>>, %arg5: memref<128x128xbf16, #tpu.memory_space<vmem>>, %arg6: memref<1x128xf32, #tpu.memory_space<vmem>>, %arg7: memref<128x128xf32, #tpu.memory_space<vmem>>, %arg8: memref<128x128xbf16, #tpu.memory_space<vmem>>) attributes {dimension_semantics = [#tpu.dimension_semantics<arbitrary>, #tpu.dimension_semantics<arbitrary>], iteration_bounds = array<i64: 2, 1>, scalar_prefetch = 0 : i64, scratch_operands = 1 : i64, tpu.core_type = #tpu.core_type<tc>, window_params = [{pipeline_mode = #tpu.pipeline_mode<synchronous>, transform_indices = @transform_0, window_bounds = array<i64: 128, 128>}, {pipeline_mode = #tpu.pipeline_mode<synchronous>, transform_indices = @transform_1, window_bounds = array<i64: 128, 128>}, {pipeline_mode = #tpu.pipeline_mode<synchronous>, transform_indices = @transform_2, window_bounds = array<i64: 1, 128>}, {pipeline_mode = #tpu.pipeline_mode<synchronous>, transform_indices = @transform_3, window_bounds = array<i64: 128, 128>}, {pipeline_mode = #tpu.pipeline_mode<synchronous>, transform_indices = @transform_4, window_bounds = array<i64: 1, 128>}, {transform_indices = @transform_5, window_bounds = array<i64: 128, 128>}]} {
    %c128_i32 = arith.constant 128 : i32
    %0 = arith.muli %arg1, %c128_i32 : i32
    %1 = tpu.assume_multiple %0, 128 : i32
    %c0_i32 = arith.constant 0 : i32
    %2 = arith.cmpi eq, %arg0, %c0_i32 : i32
    %3 = arith.extui %2 : i1 to i32
    %c0_i32_0 = arith.constant 0 : i32
    %4 = arith.cmpi ne, %3, %c0_i32_0 : i32
    scf.if %4 {
      %8 = arith.index_cast %1 : i32 to index
      %c0 = arith.constant 0 : index
      %9 = vector.load %arg2[%8, %c0] : memref<128x128xbf16, #tpu.memory_space<vmem>>, vector<128x128xbf16>
      %c0_2 = arith.constant 0 : index
      %c0_3 = arith.constant 0 : index
      %10 = vector.load %arg3[%c0_2, %c0_3] : memref<128x128xbf16, #tpu.memory_space<vmem>>, vector<128x128xbf16>
      %cst = arith.constant dense<0.000000e+00> : vector<128x128xf32>
      %11 = tpu.matmul %9, %10, %cst {dimension_numbers = #tpu.dot_dimension_numbers<[1], [0], [0], [1], [0, 0, 1, 1], [], []>} : vector<128x128xbf16>, vector<128x128xbf16>, vector<128x128xf32> -> vector<128x128xf32>
      %c0_4 = arith.constant 0 : index
      %c0_5 = arith.constant 0 : index
      %12 = vector.load %arg4[%c0_4, %c0_5] : memref<1x128xf32, #tpu.memory_space<vmem>>, vector<1x128xf32>
      %13 = vector.broadcast %12 : vector<1x128xf32> to vector<128x128xf32>
      %14 = arith.addf %11, %13 : vector<128x128xf32>
      %cst_6 = arith.constant 0.000000e+00 : f32
      %15 = vector.broadcast %cst_6 : f32 to vector<128x128xf32>
      %16 = arith.maximumf %14, %15 : vector<128x128xf32>
      %17 = arith.truncf %16 : vector<128x128xf32> to vector<128x128xbf16>
      %c0_7 = arith.constant 0 : index
      %c0_8 = arith.constant 0 : index
      %18 = vector.load %arg5[%c0_7, %c0_8] : memref<128x128xbf16, #tpu.memory_space<vmem>>, vector<128x128xbf16>
      %cst_9 = arith.constant dense<0.000000e+00> : vector<128x128xf32>
      %19 = tpu.matmul %17, %18, %cst_9 {dimension_numbers = #tpu.dot_dimension_numbers<[1], [0], [0], [1], [0, 0, 1, 1], [], []>} : vector<128x128xbf16>, vector<128x128xbf16>, vector<128x128xf32> -> vector<128x128xf32>
      %20 = arith.truncf %19 : vector<128x128xf32> to vector<128x128xbf16>
      %21 = arith.index_cast %1 : i32 to index
      %c0_10 = arith.constant 0 : index
      %22 = vector.load %arg8[%21, %c0_10] : memref<128x128xbf16, #tpu.memory_space<vmem>>, vector<128x128xbf16>
      tpu.vector_store %arg8[%21, %c0_10], %20 {strides = array<i32>} : memref<128x128xbf16, #tpu.memory_space<vmem>>, vector<128x128xbf16>,
    } else {
    }
    %c1_i32 = arith.constant 1 : i32
    %5 = arith.cmpi eq, %arg0, %c1_i32 : i32
    %6 = arith.extui %5 : i1 to i32
    %c0_i32_1 = arith.constant 0 : i32
    %7 = arith.cmpi ne, %6, %c0_i32_1 : i32
    scf.if %7 {
      %8 = arith.index_cast %1 : i32 to index
      %c0 = arith.constant 0 : index
      %9 = vector.load %arg2[%8, %c0] : memref<128x128xbf16, #tpu.memory_space<vmem>>, vector<128x128xbf16>
      %c0_2 = arith.constant 0 : index
      %c0_3 = arith.constant 0 : index
      %10 = vector.load %arg8[%c0_2, %c0_3] : memref<128x128xbf16, #tpu.memory_space<vmem>>, vector<128x128xbf16>
      %cst = arith.constant dense<0.000000e+00> : vector<128x128xf32>
      %11 = tpu.matmul %9, %10, %cst {dimension_numbers = #tpu.dot_dimension_numbers<[1], [0], [0], [1], [0, 0, 1, 1], [], []>} : vector<128x128xbf16>, vector<128x128xbf16>, vector<128x128xf32> -> vector<128x128xf32>
      %c0_4 = arith.constant 0 : index
      %c0_5 = arith.constant 0 : index
      %12 = vector.load %arg6[%c0_4, %c0_5] : memref<1x128xf32, #tpu.memory_space<vmem>>, vector<1x128xf32>
      %13 = vector.broadcast %12 : vector<1x128xf32> to vector<128x128xf32>
      %14 = arith.addf %11, %13 : vector<128x128xf32>
      %c0_6 = arith.constant 0 : index
      %c0_7 = arith.constant 0 : index
      %15 = vector.load %arg7[%c0_6, %c0_7] : memref<128x128xf32, #tpu.memory_space<vmem>>, vector<128x128xf32>
      tpu.vector_store %arg7[%c0_6, %c0_7], %14 {strides = array<i32>} : memref<128x128xf32, #tpu.memory_space<vmem>>, vector<128x128xf32>,
    } else {
    }
    return
  }
  func.func @transform_0(%arg0: i32, %arg1: i32) -> (i32, i32) {
    %c0_i32 = arith.constant 0 : i32
    %c0_i32_0 = arith.constant 0 : i32
    %c0_i32_1 = arith.constant 0 : i32
    return %c0_i32, %c0_i32_0 : i32, i32
  }
  func.func @transform_1(%arg0: i32, %arg1: i32) -> (i32, i32) {
    %c0_i32 = arith.constant 0 : i32
    %c0_i32_0 = arith.constant 0 : i32
    %c0_i32_1 = arith.constant 0 : i32
    return %c0_i32, %c0_i32_0 : i32, i32
  }
  func.func @transform_2(%arg0: i32, %arg1: i32) -> (i32, i32) {
    %c0_i32 = arith.constant 0 : i32
    %c0_i32_0 = arith.constant 0 : i32
    %c0_i32_1 = arith.constant 0 : i32
    return %c0_i32, %c0_i32_0 : i32, i32
  }
  func.func @transform_3(%arg0: i32, %arg1: i32) -> (i32, i32) {
    %c0_i32 = arith.constant 0 : i32
    %c0_i32_0 = arith.constant 0 : i32
    %c0_i32_1 = arith.constant 0 : i32
    return %c0_i32, %c0_i32_0 : i32, i32
  }
  func.func @transform_4(%arg0: i32, %arg1: i32) -> (i32, i32) {
    %c0_i32 = arith.constant 0 : i32
    %c0_i32_0 = arith.constant 0 : i32
    %c0_i32_1 = arith.constant 0 : i32
    return %c0_i32, %c0_i32_0 : i32, i32
  }
  func.func @transform_5(%arg0: i32, %arg1: i32) -> (i32, i32) {
    %0 = arith.muli %arg1, %arg0 : i32
    %c0_i32 = arith.constant 0 : i32
    %c0_i32_0 = arith.constant 0 : i32
    return %0, %c0_i32 : i32, i32
  }
}

</mosaic_0001>

<bundles_post_ra>
// kernel: a_call__.1
= control target key start
LH: loop header
LB: loop body
LE: loop exit
PB: predicated region body
PF: predicated region fallthrough
CT: control target
= control target key end

     0   :  { %s1246_s18 = smov 0   ;;  %s1248_s19 = smov 0   ;;  %s1427_s0 = inlined_call_operand.vmem [shape: bf16[128,128], index: 0, kind: input, shape index: {}]   ;;  %s1428_s1 = inlined_call_operand.vmem [shape: bf16[128,128], index: 1, kind: input, shape index: {}]   ;;  %s1429_s2 = inlined_call_operand.vmem [shape: f32[1,128], index: 2, kind: input, shape index: {}]   ;;  %s1430_s3 = inlined_call_operand.vmem [shape: bf16[128,128], index: 3, kind: input, shape index: {}]   ;;  %s1431_s4 = inlined_call_operand.vmem [shape: f32[1,128], index: 4, kind: input, shape index: {}]   ;;  %s1432_s5 = inlined_call_operand.vmem [shape: f32[128,128], index: 5, kind: output, shape index: {}]  }
   0x1   :  { %s1250_s20 = smov 0  }
   0x2 LB: > { %s27_s21 = sadd.s32 1, %s1210_s19  ;;  %p935_p0 = scmp.ge.s32.totalorder %s1214_s20, 1  ;;  %s1214_s20 = sphi %s1250_s20, %s15_s20   ;;  %s1210_s19 = sphi %s1248_s19, %s1434_s19   ;;  %s1206_s18 = sphi %s1246_s18, %s1433_s18  }
   0x3   : > { %p29_p1 = scmp.ge.s32.totalorder %s27_s21, 2  ;;  %p191_p2 = scmp.lt.s32.totalorder %s1214_s20, 3 }
   0x5   : > { %s1436_s21 = smov (%p29_p1, %s27_s21), 0  ;;  %p192_p3 = pnand %p935_p0, %p191_p2 }
   0x6   : > { %p936_p4 = scmp.ne.s32.totalorder (!%p192_p3), %s1206_s18, 0 }
   0x7   : > { %195 = sbr.rel (%p192_p3) target bundleno = 771 (0x303), region = 40 }
   0xe   : > { %228 = sbr.rel (%p936_p4) target bundleno = 511 (0x1ff), region = 44  ;;  %v1160_v0 = vld [vmem:[%s1428_s1] sm:$0xff] (!%p936_p4)   ;;  %v1161_v1 = vld [vmem:[%s1428_s1 + $0x8] sm:$0xff] (!%p936_p4)   ;;  %v1162_v2 = vld [vmem:[%s1428_s1 + $0x10] sm:$0xff] (!%p936_p4)  }
   0xf   : > { %1024 = vmatprep.subr.bf16.mxu0 (!%p936_p4), %v1160_v0  ;;  %v1163_v3 = vld [vmem:[%s1428_s1 + $0x18] sm:$0xff] (!%p936_p4)   ;;  %v1168_v4 = vld [vmem:[%s1427_s0] sm:$0xff] (!%p936_p4)   ;;  %v1165_v6 = vld [vmem:[%s1428_s1 + $0x28] sm:$0xff] (!%p936_p4)  }
  0x10   : > { %1025 = vmatpush3.bf16.msra.mxu0 (!%p936_p4), %v1160_v0  ;;  %1040 = vmatprep.mubr.bf16.mxu0 (!%p936_p4), %v1168_v4  ;;  %v1164_v5 = vld [vmem:[%s1428_s1 + $0x20] sm:$0xff] (!%p936_p4)   ;;  %v1177_v8 = vld [vmem:[%s1430_s3 + $0x8] sm:$0xff] (!%p936_p4)   ;;  %v1166_v9 = vld [vmem:[%s1428_s1 + $0x30] sm:$0xff] (!%p936_p4)  }
  0x11   : > { %1026 = vmatprep.subr.bf16.mxu0 (!%p936_p4), %v1161_v1  ;;  %v1176_v7 = vld [vmem:[%s1430_s3] sm:$0xff] (!%p936_p4)   ;;  %v1178_v10 = vld [vmem:[%s1430_s3 + $0x10] sm:$0xff] (!%p936_p4)   ;;  %v1167_v11 = vld [vmem:[%s1428_s1 + $0x38] sm:$0xff] (!%p936_p4)  }
  0x12   : > { %1056 = vmatprep.subr.bf16.mxu1 (!%p936_p4), %v1176_v7  ;;  %v1179_v12 = vld [vmem:[%s1430_s3 + $0x18] sm:$0xff] (!%p936_p4)   ;;  %v1180_v13 = vld [vmem:[%s1430_s3 + $0x20] sm:$0xff] (!%p936_p4)   ;;  %v1169_v14 = vld [vmem:[%s1427_s0 + $0x8] sm:$0xff] (!%p936_p4)  }
  0x13   : > { %1057 = vmatpush3.bf16.msra.mxu1 (!%p936_p4), %v1176_v7  ;;  %v1170_v15 = vld [vmem:[%s1427_s0 + $0x10] sm:$0xff] (!%p936_p4)   ;;  %v1181_v16 = vld [vmem:[%s1430_s3 + $0x28] sm:$0xff] (!%p936_p4)   ;;  %v1171_v17 = vld [vmem:[%s1427_s0 + $0x18] sm:$0xff] (!%p936_p4)  }
  0x14   : > { %1027 = vmatpush3.bf16.msra.mxu0 (!%p936_p4), %v1161_v1  ;;  %1058 = vmatprep.subr.bf16.mxu1 (!%p936_p4), %v1177_v8  ;;  %v1172_v18 = vld [vmem:[%s1427_s0 + $0x20] sm:$0xff] (!%p936_p4)   ;;  %v1173_v19 = vld [vmem:[%s1427_s0 + $0x28] sm:$0xff] (!%p936_p4)   ;;  %v1174_v20 = vld [vmem:[%s1427_s0 + $0x30] sm:$0xff] (!%p936_p4)  }
  0x15   : > { %1028 = vmatprep.subr.bf16.mxu0 %v1162_v2  ;;  %v1175_v21 = vld [vmem:[%s1427_s0 + $0x38] sm:$0xff]   ;;  %v1182_v22 = vld [vmem:[%s1430_s3 + $0x30] sm:$0xff]   ;;  %v937_v24 = vld [vmem:[%s1429_s2] ss:$0 sm:$0xff] }
  0x16   : > { %v1183_v23 = vld [vmem:[%s1430_s3 + $0x38] sm:$0xff]  }
  0x17   : > { %1059 = vmatpush3.bf16.msra.mxu1 %v1177_v8 }
  0x18   : > { %1029 = vmatpush3.bf16.msra.mxu0 %v1162_v2  ;;  %1060 = vmatprep.subr.bf16.mxu1 %v1178_v10 }
  0x19   : > { %1030 = vmatprep.subr.bf16.mxu0 %v1163_v3 }
  0x1b   : > { %1061 = vmatpush3.bf16.msra.mxu1 %v1178_v10 }
  0x1c   : > { %1031 = vmatpush3.bf16.msra.mxu0 %v1163_v3  ;;  %1062 = vmatprep.subr.bf16.mxu1 %v1179_v12 }
  0x1d   : > { %1032 = vmatprep.subr.bf16.mxu0 %v1164_v5 }
  0x1f   : > { %1063 = vmatpush3.bf16.msra.mxu1 %v1179_v12 }
  0x20   : > { %1033 = vmatpush3.bf16.msra.mxu0 %v1164_v5  ;;  %1064 = vmatprep.subr.bf16.mxu1 %v1180_v13 }
  0x21   : > { %1034 = vmatprep.subr.bf16.mxu0 %v1165_v6 }
  0x23   : > { %1065 = vmatpush3.bf16.msra.mxu1 %v1180_v13 }
  0x24   : > { %1035 = vmatpush3.bf16.msra.mxu0 %v1165_v6  ;;  %1066 = vmatprep.subr.bf16.mxu1 %v1181_v16 }
  0x25   : > { %1036 = vmatprep.subr.bf16.mxu0 %v1166_v9 }
  0x27   : > { %1067 = vmatpush3.bf16.msra.mxu1 %v1181_v16 }
  0x28   : > { %1037 = vmatpush3.bf16.msra.mxu0 %v1166_v9  ;;  %1068 = vmatprep.subr.bf16.mxu1 %v1182_v22 }
  0x29   : > { %1038 = vmatprep.subr.bf16.mxu0 %v1167_v11 }
  0x2b   : > { %1069 = vmatpush3.bf16.msra.mxu1 %v1182_v22 }
  0x2c   : > { %1039 = vmatpush3.bf16.msra.mxu0 %v1167_v11  ;;  %1070 = vmatprep.subr.bf16.mxu1 %v1183_v23 }
  0x2f   : > { %1041 = vmatmul.mubr.bf16.vlgmr.msra.gmra.mrb[0].mxu0 %v1169_v14  ;;  %1071 = vmatpush3.bf16.msra.mxu1 %v1183_v23 }
  0x30   : > { %1044 = vmatprep.mubr.bf16.mxu0 %v1170_v15 }
  0x37   : > { %1045 = vmatmul.mubr.bf16.gmra.mrb[4].mxu0 %v1171_v17 }
  0x38   : > { %1048 = vmatprep.mubr.bf16.mxu0 %v1172_v18 }
  0x3f   : > { %1049 = vmatmul.mubr.bf16.gmra.mrb[8].mxu0 %v1173_v19 }
  0x40   : > { %1052 = vmatprep.mubr.bf16.mxu0 %v1174_v20 }
  0x47   : > { %1053 = vmatmul.mubr.bf16.gmra.mrb[12].mxu0 %v1175_v21 }
 0x102   : > { %v1042_v25 = vpop.f32.mrb[0].mxu0 }
 0x103   : > { %v411_v26 = vadd.f32 %v1042_v25, %v937_v24  ;;  %v402_v27 = vpop.f32.mrb[1].mxu0 }
 0x104   : > { %v403_v28 = vadd.f32 %v937_v24, %v402_v27  ;;  %v1043_v29 = vpop.f32.mrb[2].mxu0 }
 0x105   : > { %v414_v30 = vadd.f32 %v1043_v29, %v937_v24  ;;  %v405_v31 = vpop.f32.mrb[3].mxu0  ;;  %v467_v33 = vmax.f32 %v411_v26, 0.0 }
 0x106   : > { %v406_v32 = vadd.f32 %v937_v24, %v405_v31  ;;  %v465_v35 = vmax.f32 %v403_v28, 0.0 }
 0x107   : > { %v468_v34 = vmax.f32 %v414_v30, 0.0 }
 0x108   : > { %v466_v36 = vmax.f32 %v406_v32, 0.0 }
 0x109   : > { %v482_v37 = vpack.c.bf16 %v468_v34, %v467_v33 }
 0x10a   : > { %v1046_v38 = vpop.f32.mrb[4].mxu0  ;;  %v481_v39 = vpack.c.bf16 %v466_v36, %v465_v35 }
 0x10b   : > { %v427_v40 = vadd.f32 %v1046_v38, %v937_v24  ;;  %v418_v41 = vpop.f32.mrb[5].mxu0 }
 0x10c   : > { %v419_v42 = vadd.f32 %v937_v24, %v418_v41  ;;  %v1047_v43 = vpop.f32.mrb[6].mxu0  ;;  %1072 = vmatprep.mubr.bf16.mxu1 %v481_v39 }
 0x10d   : > { %v430_v44 = vadd.f32 %v1047_v43, %v937_v24  ;;  %v421_v45 = vpop.f32.mrb[7].mxu0  ;;  %1073 = vmatmul.mubr.bf16.vlgmr.msra.gmra.mrb[0].mxu1 %v482_v37  ;;  %v471_v47 = vmax.f32 %v427_v40, 0.0 }
 0x10e   : > { %v422_v46 = vadd.f32 %v937_v24, %v421_v45  ;;  %v469_v49 = vmax.f32 %v419_v42, 0.0 }
 0x10f   : > { %v472_v48 = vmax.f32 %v430_v44, 0.0 }
 0x110   : > { %v470_v50 = vmax.f32 %v422_v46, 0.0 }
 0x111   : > { %v484_v51 = vpack.c.bf16 %v472_v48, %v471_v47 }
 0x112   : > { %v483_v52 = vpack.c.bf16 %v470_v50, %v469_v49  ;;  %v1050_v53 = vpop.f32.mrb[8].mxu0 }
 0x113   : > { %v443_v54 = vadd.f32 %v1050_v53, %v937_v24  ;;  %v434_v55 = vpop.f32.mrb[9].mxu0 }
 0x114   : > { %v435_v56 = vadd.f32 %v937_v24, %v434_v55  ;;  %v1051_v57 = vpop.f32.mrb[10].mxu0  ;;  %1076 = vmatprep.mubr.bf16.mxu1 %v483_v52 }
 0x115   : > { %v446_v58 = vadd.f32 %v1051_v57, %v937_v24  ;;  %v437_v59 = vpop.f32.mrb[11].mxu0  ;;  %1077 = vmatmul.mubr.bf16.gmra.mrb[4].mxu1 %v484_v51  ;;  %v475_v61 = vmax.f32 %v443_v54, 0.0 }
 0x116   : > { %v438_v60 = vadd.f32 %v937_v24, %v437_v59  ;;  %v473_v63 = vmax.f32 %v435_v56, 0.0 }
 0x117   : > { %v476_v62 = vmax.f32 %v446_v58, 0.0 }
 0x118   : > { %v474_v0 = vmax.f32 %v438_v60, 0.0 }
 0x119   : > { %v486_v1 = vpack.c.bf16 %v476_v62, %v475_v61 }
 0x11a   : > { %v485_v2 = vpack.c.bf16 %v474_v0, %v473_v63  ;;  %v1054_v3 = vpop.f32.mrb[12].mxu0 }
 0x11b   : > { %v459_v4 = vadd.f32 %v1054_v3, %v937_v24  ;;  %v450_v5 = vpop.f32.mrb[13].mxu0 }
 0x11c   : > { %v451_v6 = vadd.f32 %v937_v24, %v450_v5  ;;  %v1055_v7 = vpop.f32.mrb[14].mxu0  ;;  %1080 = vmatprep.mubr.bf16.mxu1 %v485_v2 }
 0x11d   : > { %v462_v8 = vadd.f32 %v1055_v7, %v937_v24  ;;  %v453_v9 = vpop.f32.mrb[15].mxu0  ;;  %1081 = vmatmul.mubr.bf16.gmra.mrb[8].mxu1 %v486_v1  ;;  %v479_v11 = vmax.f32 %v459_v4, 0.0 }
 0x11e   : > { %v454_v10 = vadd.f32 %v937_v24, %v453_v9  ;;  %v477_v13 = vmax.f32 %v451_v6, 0.0 }
 0x11f   : > { %v480_v12 = vmax.f32 %v462_v8, 0.0 }
 0x120   : > { %v478_v14 = vmax.f32 %v454_v10, 0.0 }
 0x121   : > { %v488_v15 = vpack.c.bf16 %v480_v12, %v479_v11 }
 0x122   : > { %v487_v16 = vpack.c.bf16 %v478_v14, %v477_v13 }
 0x124   : > { %1084 = vmatprep.mubr.bf16.mxu1 %v487_v16 }
 0x125   : > { %1085 = vmatmul.mubr.bf16.gmra.mrb[12].mxu1 %v488_v15 }
 0x1e0   : > { %v1074_v17 = vpop.f32.mrb[0].mxu1 }
 0x1e1   : > { %v587_v18 = vpop.f32.mrb[1].mxu1 }
 0x1e2   : > { %v1075_v19 = vpop.f32.mrb[2].mxu1 }
 0x1e3   : > { %v651_v20 = vpack.c.bf16 %v1075_v19, %v1074_v17  ;;  %v590_v21 = vpop.f32.mrb[3].mxu1 }
 0x1e4   : > { %v650_v22 = vpack.c.bf16 %v590_v21, %v587_v18 }
 0x1e5   : > { %663 = vst [vmem:[#allocation2 + $0x8] sm:$0xff] %v651_v20 }
 0x1e6   : > { %662 = vst [vmem:[#allocation2] sm:$0xff] %v650_v22 }
 0x1e8   : > { %v1078_v23 = vpop.f32.mrb[4].mxu1 }
 0x1e9   : > { %v603_v25 = vpop.f32.mrb[5].mxu1 }
 0x1ea   : > { %v1079_v26 = vpop.f32.mrb[6].mxu1 }
 0x1eb   : > { %v653_v24 = vpack.c.bf16 %v1079_v26, %v1078_v23  ;;  %v606_v27 = vpop.f32.mrb[7].mxu1 }
 0x1ec   : > { %v652_v28 = vpack.c.bf16 %v606_v27, %v603_v25 }
 0x1ed   : > { %665 = vst [vmem:[#allocation2 + $0x18] sm:$0xff] %v653_v24 }
 0x1ee   : > { %664 = vst [vmem:[#allocation2 + $0x10] sm:$0xff] %v652_v28 }
 0x1f0   : > { %v1082_v29 = vpop.f32.mrb[8].mxu1 }
 0x1f1   : > { %v619_v30 = vpop.f32.mrb[9].mxu1 }
 0x1f2   : > { %v1083_v31 = vpop.f32.mrb[10].mxu1 }
 0x1f3   : > { %v655_v32 = vpack.c.bf16 %v1083_v31, %v1082_v29  ;;  %v622_v33 = vpop.f32.mrb[11].mxu1 }
 0x1f4   : > { %v654_v34 = vpack.c.bf16 %v622_v33, %v619_v30 }
 0x1f5   : > { %667 = vst [vmem:[#allocation2 + $0x28] sm:$0xff] %v655_v32 }
 0x1f6   : > { %666 = vst [vmem:[#allocation2 + $0x20] sm:$0xff] %v654_v34 }
 0x1f8   : > { %v1086_v35 = vpop.f32.mrb[12].mxu1 }
 0x1f9   : > { %v635_v36 = vpop.f32.mrb[13].mxu1 }
 0x1fa   : > { %v1087_v37 = vpop.f32.mrb[14].mxu1 }
 0x1fb   : > { %v657_v38 = vpack.c.bf16 %v1087_v37, %v1086_v35  ;;  %v638_v39 = vpop.f32.mrb[15].mxu1 }
 0x1fc   : > { %v656_v40 = vpack.c.bf16 %v638_v39, %v635_v36 }
 0x1fd   : > { %669 = vst [vmem:[#allocation2 + $0x38] sm:$0xff] %v657_v38 }
 0x1fe   : > { %668 = vst [vmem:[#allocation2 + $0x30] sm:$0xff] %v656_v40 }
 0x1ff PF: > { %p962_p5 = scmp.ne.s32.totalorder %s1206_s18, 1 }
 0x200   : > { %v694_v41 = vld [vmem:[#allocation2] sm:$0xff] (!%p962_p5)  ;;  %v695_v42 = vld [vmem:[#allocation2 + $0x8] sm:$0xff] (!%p962_p5)  ;;  %v696_v43 = vld [vmem:[#allocation2 + $0x10] sm:$0xff] (!%p962_p5) }
 0x201   : > { %673 = sbr.rel (%p962_p5) target bundleno = 771 (0x303), region = 48  ;;  %1088 = vmatprep.subr.bf16.mxu0 (!%p962_p5), %v694_v41  ;;  %1120 = vmatprep.subr.bf16.mxu1 (!%p962_p5), %v694_v41  ;;  %v1184_v44 = vld [vmem:[%s1427_s0] sm:$0xff] (!%p962_p5)   ;;  %v697_v46 = vld [vmem:[#allocation2 + $0x18] sm:$0xff] (!%p962_p5)  ;;  %v699_v48 = vld [vmem:[#allocation2 + $0x28] sm:$0xff] (!%p962_p5) }
 0x202   : > { %1089 = vmatpush3.bf16.msra.mxu0 (!%p962_p5), %v694_v41  ;;  %1128 = vmatpush3.bf16.msra.mxu1 (!%p962_p5), %v694_v41  ;;  %v1185_v45 = vld [vmem:[%s1427_s0 + $0x20] sm:$0xff] (!%p962_p5)   ;;  %v1186_v51 = vld [vmem:[%s1427_s0 + $0x8] sm:$0xff] (!%p962_p5)   ;;  %v1188_v53 = vld [vmem:[%s1427_s0 + $0x10] sm:$0xff] (!%p962_p5)  }
 0x203   : > { %1090 = vmatprep.subr.bf16.mxu0 (!%p962_p5), %v695_v42  ;;  %1121 = vmatprep.subr.bf16.mxu1 (!%p962_p5), %v695_v42  ;;  %v698_v47 = vld [vmem:[#allocation2 + $0x20] sm:$0xff] (!%p962_p5)  ;;  %v1187_v52 = vld [vmem:[%s1427_s0 + $0x28] sm:$0xff] (!%p962_p5)   ;;  %v1189_v54 = vld [vmem:[%s1427_s0 + $0x30] sm:$0xff] (!%p962_p5)  }
 0x204   : > { %1104 = vmatprep.mubr.bf16.mxu0 (!%p962_p5), %v1184_v44  ;;  %1112 = vmatprep.mubr.bf16.mxu1 (!%p962_p5), %v1185_v45  ;;  %v701_v50 = vld [vmem:[#allocation2 + $0x38] sm:$0xff] (!%p962_p5)  ;;  %v963_v57 = vld [vmem:[%s1431_s4] ss:$0 sm:$0xff] (!%p962_p5) }
 0x205   : > { %v700_v49 = vld [vmem:[#allocation2 + $0x30] sm:$0xff] (!%p962_p5)  ;;  %v1190_v55 = vld [vmem:[%s1427_s0 + $0x18] sm:$0xff] (!%p962_p5)  }
 0x206   : > { %1091 = vmatpush3.bf16.msra.mxu0 (!%p962_p5), %v695_v42  ;;  %1129 = vmatpush3.bf16.msra.mxu1 (!%p962_p5), %v695_v42  ;;  %v1191_v56 = vld [vmem:[%s1427_s0 + $0x38] sm:$0xff] (!%p962_p5)  }
 0x207   : > { %1092 = vmatprep.subr.bf16.mxu0 (!%p962_p5), %v696_v43  ;;  %1122 = vmatprep.subr.bf16.mxu1 (!%p962_p5), %v696_v43 }
 0x20a   : > { %1093 = vmatpush3.bf16.msra.mxu0 %v696_v43  ;;  %1130 = vmatpush3.bf16.msra.mxu1 %v696_v43 }
 0x20b   : > { %1094 = vmatprep.subr.bf16.mxu0 %v697_v46  ;;  %1123 = vmatprep.subr.bf16.mxu1 %v697_v46 }
 0x20e   : > { %1095 = vmatpush3.bf16.msra.mxu0 %v697_v46  ;;  %1131 = vmatpush3.bf16.msra.mxu1 %v697_v46 }
 0x20f   : > { %1096 = vmatprep.subr.bf16.mxu0 %v698_v47  ;;  %1124 = vmatprep.subr.bf16.mxu1 %v698_v47 }
 0x212   : > { %1097 = vmatpush3.bf16.msra.mxu0 %v698_v47  ;;  %1132 = vmatpush3.bf16.msra.mxu1 %v698_v47 }
 0x213   : > { %1098 = vmatprep.subr.bf16.mxu0 %v699_v48  ;;  %1125 = vmatprep.subr.bf16.mxu1 %v699_v48 }
 0x216   : > { %1099 = vmatpush3.bf16.msra.mxu0 %v699_v48  ;;  %1133 = vmatpush3.bf16.msra.mxu1 %v699_v48 }
 0x217   : > { %1100 = vmatprep.subr.bf16.mxu0 %v700_v49  ;;  %1126 = vmatprep.subr.bf16.mxu1 %v700_v49 }
 0x21a   : > { %1101 = vmatpush3.bf16.msra.mxu0 %v700_v49  ;;  %1134 = vmatpush3.bf16.msra.mxu1 %v700_v49 }
 0x21b   : > { %1102 = vmatprep.subr.bf16.mxu0 %v701_v50  ;;  %1127 = vmatprep.subr.bf16.mxu1 %v701_v50 }
 0x21e   : > { %1103 = vmatpush3.bf16.msra.mxu0 %v701_v50  ;;  %1135 = vmatpush3.bf16.msra.mxu1 %v701_v50 }
 0x221   : > { %1105 = vmatmul.mubr.bf16.vlgmr.msra.gmra.mrb[0].mxu0 %v1186_v51  ;;  %1113 = vmatmul.mubr.bf16.vlgmr.msra.gmra.mrb[0].mxu1 %v1187_v52 }
 0x222   : > { %1108 = vmatprep.mubr.bf16.mxu0 %v1188_v53  ;;  %1116 = vmatprep.mubr.bf16.mxu1 %v1189_v54 }
 0x229   : > { %1109 = vmatmul.mubr.bf16.gmra.mrb[4].mxu0 %v1190_v55  ;;  %1117 = vmatmul.mubr.bf16.gmra.mrb[4].mxu1 %v1191_v56 }
 0x2f4   : > { %v1106_v58 = vpop.f32.mrb[0].mxu0  ;;  %v1114_v59 = vpop.f32.mrb[0].mxu1 }
 0x2f5   : > { %v800_v60 = vadd.f32 %v1106_v58, %v963_v57  ;;  %v832_v61 = vadd.f32 %v1114_v59, %v963_v57  ;;  %v791_v62 = vpop.f32.mrb[1].mxu0  ;;  %v823_v63 = vpop.f32.mrb[1].mxu1 }
 0x2f6   : > { %v792_v0 = vadd.f32 %v963_v57, %v791_v62  ;;  %v824_v1 = vadd.f32 %v963_v57, %v823_v63  ;;  %v1107_v2 = vpop.f32.mrb[2].mxu0  ;;  %v1115_v3 = vpop.f32.mrb[2].mxu1 }
 0x2f7   : > { %856 = vst [vmem:[%s1432_s5 + $0x10] sm:$0xff] %v800_v60  ;;  %864 = vst [vmem:[%s1432_s5 + $0x50] sm:$0xff] %v832_v61  ;;  %v803_v4 = vadd.f32 %v1107_v2, %v963_v57  ;;  %v835_v5 = vadd.f32 %v1115_v3, %v963_v57  ;;  %v794_v6 = vpop.f32.mrb[3].mxu0  ;;  %v826_v7 = vpop.f32.mrb[3].mxu1 }
 0x2f8   : > { %854 = vst [vmem:[%s1432_s5] sm:$0xff] %v792_v0  ;;  %862 = vst [vmem:[%s1432_s5 + $0x40] sm:$0xff] %v824_v1  ;;  %v795_v8 = vadd.f32 %v963_v57, %v794_v6  ;;  %v827_v9 = vadd.f32 %v963_v57, %v826_v7 }
 0x2f9   : > { %857 = vst [vmem:[%s1432_s5 + $0x18] sm:$0xff] %v803_v4  ;;  %865 = vst [vmem:[%s1432_s5 + $0x58] sm:$0xff] %v835_v5 }
 0x2fa   : > { %855 = vst [vmem:[%s1432_s5 + $0x8] sm:$0xff] %v795_v8  ;;  %863 = vst [vmem:[%s1432_s5 + $0x48] sm:$0xff] %v827_v9 }
 0x2fc   : > { %v1110_v10 = vpop.f32.mrb[4].mxu0  ;;  %v1118_v11 = vpop.f32.mrb[4].mxu1 }
 0x2fd   : > { %v816_v12 = vadd.f32 %v1110_v10, %v963_v57  ;;  %v848_v13 = vadd.f32 %v1118_v11, %v963_v57  ;;  %v807_v14 = vpop.f32.mrb[5].mxu0  ;;  %v839_v15 = vpop.f32.mrb[5].mxu1 }
 0x2fe   : > { %v808_v16 = vadd.f32 %v963_v57, %v807_v14  ;;  %v840_v17 = vadd.f32 %v963_v57, %v839_v15  ;;  %v1111_v18 = vpop.f32.mrb[6].mxu0  ;;  %v1119_v19 = vpop.f32.mrb[6].mxu1 }
 0x2ff   : > { %860 = vst [vmem:[%s1432_s5 + $0x30] sm:$0xff] %v816_v12  ;;  %868 = vst [vmem:[%s1432_s5 + $0x70] sm:$0xff] %v848_v13  ;;  %v819_v20 = vadd.f32 %v1111_v18, %v963_v57  ;;  %v851_v21 = vadd.f32 %v1119_v19, %v963_v57  ;;  %v810_v22 = vpop.f32.mrb[7].mxu0  ;;  %v842_v23 = vpop.f32.mrb[7].mxu1 }
 0x300   : > { %858 = vst [vmem:[%s1432_s5 + $0x20] sm:$0xff] %v808_v16  ;;  %866 = vst [vmem:[%s1432_s5 + $0x60] sm:$0xff] %v840_v17  ;;  %v811_v25 = vadd.f32 %v963_v57, %v810_v22  ;;  %v843_v26 = vadd.f32 %v963_v57, %v842_v23 }
 0x301   : > { %861 = vst [vmem:[%s1432_s5 + $0x38] sm:$0xff] %v819_v20  ;;  %869 = vst [vmem:[%s1432_s5 + $0x78] sm:$0xff] %v851_v21 }
 0x302   : > { %859 = vst [vmem:[%s1432_s5 + $0x28] sm:$0xff] %v811_v25  ;;  %867 = vst [vmem:[%s1432_s5 + $0x68] sm:$0xff] %v843_v26 }
 0x303 PF: > { %s15_s20 = sadd.s32 1, %s1214_s20   ;;  %s1433_s18 = smov %s1210_s19 }
 0x304   : > { %p12_p6 = scmp.ge.s32.totalorder %s15_s20, 4   ;;  %s1434_s19 = smov %s1436_s21 }
 0x306   :  { %14 = sbr.rel (!%p12_p6) target bundleno = 2 (0x2), region = 78 }

</bundles_post_ra>
